<compile_context>
chip_gen: v7x
topology: tpu7x:2x2x1
jax: 0.10.0
libtpu: 0.0.40
codegen_flags: <defaults>
</compile_context>

<pallas_src>
import jax
import jax.numpy as jnp
from jax import lax
from jax.experimental import pallas as pl
from jax.experimental.pallas import tpu as pltpu


def _contrastive_loss_kernel(temp_ref, img_ref, txt_ref, loss_ref,
                             m_ref, l_ref, diag_ref):
    # temp_ref: SMEM (1,) scalar prefetch (temperature)
    # img_ref : VMEM (block_q, D) image rows for this q tile (resident across ki)
    # txt_ref : VMEM (block_k, D) text rows for this k tile (streamed)
    # loss_ref: VMEM (block_q, 1) per-row loss output (written at last k step)
    # m_ref, l_ref, diag_ref: VMEM (block_q, 1) f32 scratch
    qi = pl.program_id(0)
    ki = pl.program_id(1)
    block_q = img_ref.shape[0]
    block_k = txt_ref.shape[0]

    @pl.when(ki == 0)
    def _init():
        m_ref[...] = jnp.full(m_ref.shape, -jnp.inf, jnp.float32)
        l_ref[...] = jnp.zeros(l_ref.shape, jnp.float32)
        diag_ref[...] = jnp.zeros(diag_ref.shape, jnp.float32)

    # (block_q, block_k) logits tile on the MXU, f32 accumulate, contraction
    # over the feature dim of both operands (no materialized transpose).
    logits = lax.dot_general(
        img_ref[...], txt_ref[...],
        dimension_numbers=(((1,), (1,)), ((), ())),
        preferred_element_type=jnp.float32)

    # Fold 1/temperature into the already-live f32 logits tile (once per tile,
    # exact scalar reciprocal from SMEM) — not into the bf16/f32 image tile.
    inv_t = 1.0 / temp_ref[0]
    logits = logits * inv_t

    # Online, numerically stable log-sum-exp update in (block_q, 1) layout.
    m_prev = m_ref[...]
    m_new = jnp.maximum(m_prev, jnp.max(logits, axis=-1, keepdims=True))
    alpha = jnp.exp(m_prev - m_new)
    l_ref[...] = alpha * l_ref[...] + jnp.sum(jnp.exp(logits - m_new),
                                              axis=-1, keepdims=True)
    m_ref[...] = m_new

    # Correct-class logit logits[i, i]: pulled straight out of the f32 logits
    # tile (same MXU-accumulated values as the LSE path) in the step(s) whose
    # column range overlaps this row tile's diagonal band.
    row_start = qi * block_q
    col_start = ki * block_k

    @pl.when(jnp.logical_and(row_start < col_start + block_k,
                             col_start < row_start + block_q))
    def _diag():
        row_ids = lax.broadcasted_iota(jnp.int32, (block_q, block_k), 0) + row_start
        col_ids = lax.broadcasted_iota(jnp.int32, (block_q, block_k), 1) + col_start
        on_diag = row_ids == col_ids
        diag_ref[...] += jnp.sum(jnp.where(on_diag, logits, 0.0),
                                 axis=-1, keepdims=True)

    # Finalize per-row loss at the last reduction step.
    @pl.when(ki == pl.num_programs(1) - 1)
    def _finalize():
        loss_ref[...] = m_ref[...] + jnp.log(l_ref[...]) - diag_ref[...]


def _default_block_q(batch):
    """Per-generation default query tile (the arithmetic-intensity knob)."""
    try:
        kind = jax.devices()[0].device_kind.lower()
    except Exception:  # pragma: no cover - defensive
        kind = ""
    if "v6" in kind:
        target = 1024          # v6e roofline crossover ~700 flop/byte
    elif "v7" in kind:
        target = 512           # v7x: faster HBM, keep >=2 tiles for 2 TCs
    else:
        target = 512           # v5e / unknown: crossover ~240 flop/byte, margin
    return min(batch, target)


def contrastive_loss(image_emb, text_emb, temperature, *,
                     block_q=None, block_k=None):
    """image_emb: (B, D), text_emb: (B, D), temperature: scalar -> scalar f32 loss."""
    B, D = image_emb.shape
    assert text_emb.shape == (B, D)

    if block_q is None:
        block_q = _default_block_q(B)
    if block_k is None:
        block_k = min(B, 256)   # MXU-friendly streamed tile; bigger only adds exp/vregs

    assert B % block_q == 0 and B % block_k == 0, (
        "batch must be divisible by the tile sizes (pad the batch otherwise)")
    if image_emb.dtype == jnp.bfloat16 and block_q < B:
        # bf16 packs 16 rows per sublane group; partial tiles must respect it.
        assert block_q % 16 == 0 and block_k % 16 == 0

    temp = jnp.asarray(temperature, dtype=jnp.float32).reshape((1,))

    # Size scoped VMEM from the actual buffers (double-buffered inputs/output,
    # f32 logits tile, row-stat scratch), with headroom; cap at 64 MiB so the
    # same limit is safe on v7x (64 MiB physical VMEM) as well as v5e/v6e.
    itemsize = jnp.dtype(image_emb.dtype).itemsize
    vmem_bytes = (2 * block_q * D * itemsize          # image tile x2 buffers
                  + 3 * block_k * D * itemsize        # text tile (deep-buffer headroom)
                  + 2 * block_q * 4                   # output rows x2 buffers
                  + 3 * block_q * 4                   # m / l / diag scratch
                  + block_q * block_k * 4)            # live f32 logits tile
    vmem_limit = int(min(max(2 * vmem_bytes, 32 * 1024 * 1024), 64 * 1024 * 1024))

    grid_spec = pltpu.PrefetchScalarGridSpec(
        num_scalar_prefetch=1,                        # temperature -> SMEM
        grid=(B // block_q, B // block_k),            # (query rows, text cols)
        in_specs=[
            pl.BlockSpec((block_q, D), lambda qi, ki, t_ref: (qi, 0)),   # image rows
            # TODO(synk): if a profile shows exposed DMA on the text stream,
            # add pipeline_mode=pl.Buffered(3) here.
            pl.BlockSpec((block_k, D), lambda qi, ki, t_ref: (ki, 0)),   # text rows
        ],
        out_specs=pl.BlockSpec((block_q, 1), lambda qi, ki, t_ref: (qi, 0)),
        scratch_shapes=[
            pltpu.VMEM((block_q, 1), jnp.float32),    # running row max
            pltpu.VMEM((block_q, 1), jnp.float32),    # running row sum-exp
            pltpu.VMEM((block_q, 1), jnp.float32),    # correct-class logit
        ],
    )

    row_loss = pl.pallas_call(
        _contrastive_loss_kernel,
        out_shape=jax.ShapeDtypeStruct((B, 1), jnp.float32),
        grid_spec=grid_spec,
        compiler_params=pltpu.CompilerParams(
            dimension_semantics=("parallel", "arbitrary"),
            vmem_limit_bytes=vmem_limit),
    )(temp, image_emb, text_emb)

    return jnp.mean(row_loss)


def _reference_loss(image_emb, text_emb, temperature):
    logits = (image_emb @ text_emb.T) / temperature
    lse = jax.scipy.special.logsumexp(logits, axis=-1)
    diag = jnp.diagonal(logits)
    return jnp.mean(lse - diag)


if __name__ == "__main__":
    key = jax.random.PRNGKey(0)
    k1, k2 = jax.random.split(key)

    B, D = 8, 32                     # batch of paired (image, text) embeddings
    image_emb = jax.random.normal(k1, (B, D), dtype=jnp.float32)
    text_emb = jax.random.normal(k2, (B, D), dtype=jnp.float32)

    # nn.Parameter(torch.tensor(0.2)) — deterministic init from the module.
    temperature = 0.2

    loss = contrastive_loss(image_emb, text_emb, temperature)
    jax.block_until_ready(loss)

    ref = _reference_loss(image_emb, text_emb, temperature)
    assert jnp.allclose(loss, ref, atol=1e-4, rtol=1e-4), (loss, ref)

    print("KERNEL_OK")
</pallas_src>

<mosaic_0001>
module attributes {stable_mosaic.version = 11 : i64} {
  func.func @_contrastive_loss_kernel(%arg0: i32, %arg1: i32, %arg2: memref<1xf32, #tpu.memory_space<smem>>, %arg3: memref<8x32xf32, #tpu.memory_space<vmem>>, %arg4: memref<8x32xf32, #tpu.memory_space<vmem>>, %arg5: memref<8x1xf32, #tpu.memory_space<vmem>>, %arg6: memref<8x1xf32, #tpu.memory_space<vmem>>, %arg7: memref<8x1xf32, #tpu.memory_space<vmem>>, %arg8: memref<8x1xf32, #tpu.memory_space<vmem>>) attributes {dimension_semantics = [#tpu.dimension_semantics<parallel>, #tpu.dimension_semantics<arbitrary>], iteration_bounds = array<i64: 1, 1>, scalar_prefetch = 1 : i64, scratch_operands = 3 : i64, tpu.core_type = #tpu.core_type<tc>, window_params = [{transform_indices = @transform_0, window_bounds = array<i64: 8, 32>}, {transform_indices = @transform_1, window_bounds = array<i64: 8, 32>}, {transform_indices = @transform_2, window_bounds = array<i64: 8, 1>}]} {
    %c0_i32 = arith.constant 0 : i32
    %0 = arith.cmpi eq, %arg1, %c0_i32 : i32
    %1 = arith.extui %0 : i1 to i32
    %c0_i32_0 = arith.constant 0 : i32
    %2 = arith.cmpi ne, %1, %c0_i32_0 : i32
    scf.if %2 {
      %cst_22 = arith.constant 0xFF800000 : f32
      %38 = vector.broadcast %cst_22 : f32 to vector<8x1xf32>
      %c0_23 = arith.constant 0 : index
      %c0_24 = arith.constant 0 : index
      %39 = vector.load %arg6[%c0_23, %c0_24] : memref<8x1xf32, #tpu.memory_space<vmem>>, vector<8x1xf32>
      tpu.vector_store %arg6[%c0_23, %c0_24], %38 {strides = array<i32>} : memref<8x1xf32, #tpu.memory_space<vmem>>, vector<8x1xf32>,
      %cst_25 = arith.constant 0.000000e+00 : f32
      %40 = vector.broadcast %cst_25 : f32 to vector<8x1xf32>
      %c0_26 = arith.constant 0 : index
      %c0_27 = arith.constant 0 : index
      %41 = vector.load %arg7[%c0_26, %c0_27] : memref<8x1xf32, #tpu.memory_space<vmem>>, vector<8x1xf32>
      tpu.vector_store %arg7[%c0_26, %c0_27], %40 {strides = array<i32>} : memref<8x1xf32, #tpu.memory_space<vmem>>, vector<8x1xf32>,
      %cst_28 = arith.constant 0.000000e+00 : f32
      %42 = vector.broadcast %cst_28 : f32 to vector<8x1xf32>
      %c0_29 = arith.constant 0 : index
      %c0_30 = arith.constant 0 : index
      %43 = vector.load %arg8[%c0_29, %c0_30] : memref<8x1xf32, #tpu.memory_space<vmem>>, vector<8x1xf32>
      tpu.vector_store %arg8[%c0_29, %c0_30], %42 {strides = array<i32>} : memref<8x1xf32, #tpu.memory_space<vmem>>, vector<8x1xf32>,
    } else {
    }
    %c0 = arith.constant 0 : index
    %c0_1 = arith.constant 0 : index
    %3 = vector.load %arg3[%c0, %c0_1] : memref<8x32xf32, #tpu.memory_space<vmem>>, vector<8x32xf32>
    %c0_2 = arith.constant 0 : index
    %c0_3 = arith.constant 0 : index
    %4 = vector.load %arg4[%c0_2, %c0_3] : memref<8x32xf32, #tpu.memory_space<vmem>>, vector<8x32xf32>
    %cst = arith.constant dense<0.000000e+00> : vector<8x8xf32>
    %5 = tpu.matmul %3, %4, %cst {dimension_numbers = #tpu.dot_dimension_numbers<[1], [1], [0], [0], [0, 0, 1, 0], [], []>} : vector<8x32xf32>, vector<8x32xf32>, vector<8x8xf32> -> vector<8x8xf32>
    %c0_4 = arith.constant 0 : index
    %6 = memref.load %arg2[%c0_4] : memref<1xf32, #tpu.memory_space<smem>>
    %cst_5 = arith.constant 1.000000e+00 : f32
    %7 = arith.divf %cst_5, %6 : f32
    %8 = vector.broadcast %7 : f32 to vector<8x8xf32>
    %9 = arith.mulf %5, %8 : vector<8x8xf32>
    %c0_6 = arith.constant 0 : index
    %c0_7 = arith.constant 0 : index
    %10 = vector.load %arg6[%c0_6, %c0_7] : memref<8x1xf32, #tpu.memory_space<vmem>>, vector<8x1xf32>
    %cst_8 = arith.constant dense<0xFF800000> : vector<8xf32>
    %11 = vector.multi_reduction <maximumf>, %9, %cst_8 [1] : vector<8x8xf32> to vector<8xf32>
    %12 = vector.shape_cast %11 : vector<8xf32> to vector<8x1xf32>
    %13 = arith.maximumf %10, %12 : vector<8x1xf32>
    %14 = arith.subf %10, %13 : vector<8x1xf32>
    %15 = math.exp %14 : vector<8x1xf32>
    %c0_9 = arith.constant 0 : index
    %c0_10 = arith.constant 0 : index
    %16 = vector.load %arg7[%c0_9, %c0_10] : memref<8x1xf32, #tpu.memory_space<vmem>>, vector<8x1xf32>
    %17 = arith.mulf %15, %16 : vector<8x1xf32>
    %18 = vector.broadcast %13 : vector<8x1xf32> to vector<8x8xf32>
    %19 = arith.subf %9, %18 : vector<8x8xf32>
    %20 = math.exp %19 : vector<8x8xf32>
    %cst_11 = arith.constant dense<0.000000e+00> : vector<8xf32>
    %21 = vector.multi_reduction <add>, %20, %cst_11 [1] : vector<8x8xf32> to vector<8xf32>
    %22 = vector.shape_cast %21 : vector<8xf32> to vector<8x1xf32>
    %23 = arith.addf %17, %22 : vector<8x1xf32>
    %c0_12 = arith.constant 0 : index
    %c0_13 = arith.constant 0 : index
    %24 = vector.load %arg7[%c0_12, %c0_13] : memref<8x1xf32, #tpu.memory_space<vmem>>, vector<8x1xf32>
    tpu.vector_store %arg7[%c0_12, %c0_13], %23 {strides = array<i32>} : memref<8x1xf32, #tpu.memory_space<vmem>>, vector<8x1xf32>,
    %c0_14 = arith.constant 0 : index
    %c0_15 = arith.constant 0 : index
    %25 = vector.load %arg6[%c0_14, %c0_15] : memref<8x1xf32, #tpu.memory_space<vmem>>, vector<8x1xf32>
    tpu.vector_store %arg6[%c0_14, %c0_15], %13 {strides = array<i32>} : memref<8x1xf32, #tpu.memory_space<vmem>>, vector<8x1xf32>,
    %c8_i32 = arith.constant 8 : i32
    %26 = arith.muli %arg0, %c8_i32 : i32
    %c8_i32_16 = arith.constant 8 : i32
    %27 = arith.muli %arg1, %c8_i32_16 : i32
    %c8_i32_17 = arith.constant 8 : i32
    %28 = arith.addi %27, %c8_i32_17 : i32
    %29 = arith.cmpi slt, %26, %28 : i32
    %c8_i32_18 = arith.constant 8 : i32
    %30 = arith.addi %26, %c8_i32_18 : i32
    %31 = arith.cmpi slt, %27, %30 : i32
    %32 = arith.andi %29, %31 : i1
    %33 = arith.extui %32 : i1 to i32
    %c0_i32_19 = arith.constant 0 : i32
    %34 = arith.cmpi ne, %33, %c0_i32_19 : i32
    scf.if %34 {
      %38 = tpu.iota {dimensions = array<i32: 0>} : vector<8x8xi32>
      %39 = vector.broadcast %26 : i32 to vector<8x8xi32>
      %40 = arith.addi %38, %39 : vector<8x8xi32>
      %41 = tpu.iota {dimensions = array<i32: 1>} : vector<8x8xi32>
      %42 = vector.broadcast %27 : i32 to vector<8x8xi32>
      %43 = arith.addi %41, %42 : vector<8x8xi32>
      %44 = arith.cmpi eq, %40, %43 : vector<8x8xi32>
      %c0_22 = arith.constant 0 : index
      %c0_23 = arith.constant 0 : index
      %45 = vector.load %arg8[%c0_22, %c0_23] : memref<8x1xf32, #tpu.memory_space<vmem>>, vector<8x1xf32>
      %cst_24 = arith.constant 0.000000e+00 : f32
      %46 = vector.broadcast %cst_24 : f32 to vector<8x8xf32>
      %47 = arith.select %44, %9, %46 : vector<8x8xi1>, vector<8x8xf32>
      %cst_25 = arith.constant dense<0.000000e+00> : vector<8xf32>
      %48 = vector.multi_reduction <add>, %47, %cst_25 [1] : vector<8x8xf32> to vector<8xf32>
      %49 = vector.shape_cast %48 : vector<8xf32> to vector<8x1xf32>
      %50 = arith.addf %45, %49 : vector<8x1xf32>
      %c0_26 = arith.constant 0 : index
      %c0_27 = arith.constant 0 : index
      %51 = vector.load %arg8[%c0_26, %c0_27] : memref<8x1xf32, #tpu.memory_space<vmem>>, vector<8x1xf32>
      tpu.vector_store %arg8[%c0_26, %c0_27], %50 {strides = array<i32>} : memref<8x1xf32, #tpu.memory_space<vmem>>, vector<8x1xf32>,
    } else {
    }
    %c0_i32_20 = arith.constant 0 : i32
    %35 = arith.cmpi eq, %arg1, %c0_i32_20 : i32
    %36 = arith.extui %35 : i1 to i32
    %c0_i32_21 = arith.constant 0 : i32
    %37 = arith.cmpi ne, %36, %c0_i32_21 : i32
    scf.if %37 {
      %c0_22 = arith.constant 0 : index
      %c0_23 = arith.constant 0 : index
      %38 = vector.load %arg6[%c0_22, %c0_23] : memref<8x1xf32, #tpu.memory_space<vmem>>, vector<8x1xf32>
      %c0_24 = arith.constant 0 : index
      %c0_25 = arith.constant 0 : index
      %39 = vector.load %arg7[%c0_24, %c0_25] : memref<8x1xf32, #tpu.memory_space<vmem>>, vector<8x1xf32>
      %40 = math.log %39 : vector<8x1xf32>
      %41 = arith.addf %38, %40 : vector<8x1xf32>
      %c0_26 = arith.constant 0 : index
      %c0_27 = arith.constant 0 : index
      %42 = vector.load %arg8[%c0_26, %c0_27] : memref<8x1xf32, #tpu.memory_space<vmem>>, vector<8x1xf32>
      %43 = arith.subf %41, %42 : vector<8x1xf32>
      %c0_28 = arith.constant 0 : index
      %c0_29 = arith.constant 0 : index
      %44 = vector.load %arg5[%c0_28, %c0_29] : memref<8x1xf32, #tpu.memory_space<vmem>>, vector<8x1xf32>
      tpu.vector_store %arg5[%c0_28, %c0_29], %43 {strides = array<i32>} : memref<8x1xf32, #tpu.memory_space<vmem>>, vector<8x1xf32>,
    } else {
    }
    return
  }
  func.func @transform_0(%arg0: i32, %arg1: i32, %arg2: memref<1xf32, #tpu.memory_space<smem>>) -> (i32, i32) {
    %c0_i32 = arith.constant 0 : i32
    %c0_i32_0 = arith.constant 0 : i32
    return %arg0, %c0_i32 : i32, i32
  }
  func.func @transform_1(%arg0: i32, %arg1: i32, %arg2: memref<1xf32, #tpu.memory_space<smem>>) -> (i32, i32) {
    %c0_i32 = arith.constant 0 : i32
    %c0_i32_0 = arith.constant 0 : i32
    return %arg1, %c0_i32 : i32, i32
  }
  func.func @transform_2(%arg0: i32, %arg1: i32, %arg2: memref<1xf32, #tpu.memory_space<smem>>) -> (i32, i32) {
    %c0_i32 = arith.constant 0 : i32
    %c0_i32_0 = arith.constant 0 : i32
    return %arg0, %c0_i32 : i32, i32
  }
}

</mosaic_0001>

<bundles_post_ra>
// kernel: tpu_custom_call.1
= control target key start
LH: loop header
LB: loop body
LE: loop exit
PB: predicated region body
PF: predicated region fallthrough
CT: control target
= control target key end

     0   :  { %9 = vsyncpa [#allocation8], 0  ;;  %s339_s0 = inlined_call_operand.<no memory space> [shape: f32[1], index: 0, kind: input, shape index: {}]   ;;  %s340_s1 = inlined_call_operand.hbm [shape: f32[8,32], index: 1, kind: input, shape index: {}]   ;;  %s341_s2 = inlined_call_operand.hbm [shape: f32[8,32], index: 2, kind: input, shape index: {}]   ;;  %s342_s3 = inlined_call_operand.vmem [shape: f32[8,1], index: 3, kind: output, shape index: {}]  }
   0x1   :  { %10 = vsyncpa [#allocation10], 0  ;;  %s273_s12 = smov [#allocation7]   ;;  %s274_s14 = smov [#allocation9]  }
   0x2   :  { %s17_s13 = sshll.u32 %s273_s12, 4  ;;  %s27_s15 = sshll.u32 %s274_s14, 4  ;;  %s18_s13 = int_to_ptr.vmem [resolvable:$true] %s17_s13  ;;  %s28_s15 = int_to_ptr.vmem [resolvable:$true] %s27_s15 }
   0x3   :  { %s225_s18 = scalar_lea.hbm %s340_s1, 128 }
   0x4   :  { %p226_p0 = scmp.ne.s32.totalorder %s340_s1, %s225_s18  ;;  %p229_p1 = scmp.lt.u32.totalorder %s225_s18, %s340_s1 }
   0x6   :  { %p231_p2 = pnand %p229_p1, %p226_p0 }
   0x8   :  { %234 = shalt.err (!%p231_p2)
}
   0x9   :  { %s235_s23 = scalar_lea.vmem %s18_s13, 128  ;;  %p240_p4 = scmp.lt.s32.totalorder %s18_s13, %s18_s13 }
   0xa   :  { %p236_p3 = scmp.ne.s32.totalorder %s18_s13, %s235_s23  ;;  %p241_p5 = scmp.lt.s32.totalorder %s235_s23, %s235_s23 }
   0xc   :  { %p242_p6 = por %p241_p5, %p240_p4 }
   0xe   :  { %p243_p7 = pnand %p242_p6, %p236_p3 }
  0x10   :  { %246 = shalt.err (!%p243_p7)
}
  0x11   :  { %20 = dma.hbm_to_vmem [thread:$0]  %s340_s1, 128, %s18_s13, [#allocation8]  }
  0x12   :  { %s247_s28 = scalar_lea.hbm %s341_s2, 128 }
  0x13   :  { %p248_p8 = scmp.ne.s32.totalorder %s341_s2, %s247_s28  ;;  %p251_p9 = scmp.lt.u32.totalorder %s247_s28, %s341_s2 }
  0x15   :  { %p253_p10 = pnand %p251_p9, %p248_p8 }
  0x17   :  { %256 = shalt.err (!%p253_p10)
}
  0x18   :  { %s257_s6 = scalar_lea.vmem %s28_s15, 128  ;;  %p262_p12 = scmp.lt.s32.totalorder %s28_s15, %s28_s15 }
  0x19   :  { %p258_p11 = scmp.ne.s32.totalorder %s28_s15, %s257_s6  ;;  %p263_p13 = scmp.lt.s32.totalorder %s257_s6, %s257_s6 }
  0x1b   :  { %p264_p0 = por %p263_p13, %p262_p12 }
  0x1d   :  { %p265_p1 = pnand %p264_p0, %p258_p11 }
  0x1f   :  { %268 = shalt.err (!%p265_p1)
}
  0x20   :  { %30 = dma.hbm_to_vmem [thread:$0]  %s341_s2, 128, %s28_s15, [#allocation10]  }
  0x21   :  { %269 = dma.done.wait [#allocation8], 128  }
  0x22   :  { %270 = vsyncadd [#allocation8], 4294967168 }
  0x23   :  { %271 = dma.done.wait [#allocation10], 128  }
  0x24   :  { %272 = vsyncadd [#allocation10], 4294967168  ;;  %vm41_vm0 = vcmask 7168   ;;  %v275_v0 = vmov 0.0   ;;  %vm276_vm1 = vmmov 0   ;;  %v125_v1 = vstv %s339_s0  ;;  %v46_v2 = vld [vmem:[#allocation9] sm:$0xff] }
  0x25   :  { %43 = vst.msk [vmem:[#allocation3] sm:$0xff] %vm41_vm0, %v275_v0  ;;  %44 = vst.msk [vmem:[#allocation4] sm:$0xff] %vm41_vm0, %v275_v0  ;;  %203 = vmatprep.subr.mxu0 %v275_v0  ;;  %205 = vmatprep.mubr.msk.f32.mxu0 %vm276_vm1, %v275_v0  ;;  %217 = vrcp.f32 %v125_v1  ;;  %vm47_vm2 = vcmask 261120   ;;  %v45_v3 = vld [vmem:[#allocation7] sm:$0xff]  ;;  %v277_v5 = vmov -inf   ;;  %vm131_vm3 = vcmask 64512  }
  0x26   :  { %204 = vmatpush3.xpose.msk.msra.mxu0 %vm47_vm2, %v46_v2  ;;  %42 = vst.msk [vmem:[#allocation2] sm:$0xff] %vm41_vm0, %v277_v5  ;;  %v278_v11 = vmov 0   ;;  %v166_v19 = vlaneseq }
  0x27   :  { %216 = vset.pattern.permute.xlu0 %v278_v11 }
  0x28   :  { %v167_v20 = vshrl.u32 %v166_v19, 7  ;;  %v171_v21 = vand.u32 127, %v166_v19 }
  0x29   :  { %206 = vmatmul.mubr.msk.f32.vlgmr.msra.gmra.mrb[0].mxu0 %vm47_vm2, %v45_v3 }
  0x2a   :  { %vm174_vm4 = vcmp.eq.s32.totalorder %v167_v20, %v171_v21 }
  0x2c   :  { %v139_v28 = vld [vmem:[#allocation3] sm:$0xff]  ;;  %v175_v32 = vld [vmem:[#allocation4] sm:$0xff] }
  0x2d   :  { %v130_v12 = vld [vmem:[#allocation2] sm:$0xff] }
  0x2f   :  { %v218_v4 = vpop.eup %217 }
  0x30   :  { %208 = vpush %v218_v4 }
  0x61   :  { %s209_s2 = spop %208 }
  0x62   :  { %v128_v6 = vstv %s209_s2 }
  0xfc   :  { %v120_v7 = vpop.f32.mrb[0].mxu0 }
  0xfd   :  { %v129_v8 = vmul.f32 %v128_v6, %v120_v7  ;;  %v207_v9 = vpop.f32.mrb[1].mxu0 }
  0xff   :  { %v132_v10 = vsel %vm131_vm3, %v129_v8, -inf  ;;  %v176_v24 = vsel %vm174_vm4, %v129_v8, 0.0 }
 0x100   :  { %133 = vmax.xlane.f32.xlu0 %v132_v10  ;;  %v177_v25 = vsel %vm131_vm3, %v176_v24, 0.0 }
 0x18d   :  { %v134_v13 = vpop.xlane.xlu0 %133 }
 0x18e   :  { %v135_v14 = vmax.f32 %v130_v12, %v134_v13 }
 0x190   :  { %v136_v15 = vsub.f32 %v130_v12, %v135_v14  ;;  %155 = vst.msk [vmem:[#allocation2] sm:$0xff] %vm41_vm0, %v135_v14  ;;  %143 = vperm.xlu0 %216, %v135_v14  }
 0x192   :  { %v137_v26 = vmul.f32 1.442695, %v136_v15 }
 0x197   :  { %v185_v38 = vld [vmem:[#allocation2] sm:$0xff] }
 0x20f   :  { %v144_v16 = vpop.permute.xlu0 %143 }
 0x210   :  { %v146_v17 = vsub.f32 %v129_v8, %v144_v16 }
 0x212   :  { %v147_v18 = vmul.f32 1.442695, %v146_v17 }
 0x214   :  { %219 = vpow2.f32 %v147_v18 }
 0x215   :  { %221 = vpow2.f32 %v137_v26 }
 0x21e   :  { %v220_v22 = vpop.eup %219 }
 0x21f   :  { %v149_v23 = vsel %vm131_vm3, %v220_v22, 0.0  ;;  %v222_v27 = vpop.eup %221 }
 0x220   :  { %150 = vadd.xlane.f32.xlu1 %v149_v23  ;;  %v140_v29 = vmul.f32 %v222_v27, %v139_v28 }
 0x224   :  { %178 = vadd.xlane.f32.xlu1 %v177_v25 }
 0x2ad   :  { %v151_v30 = vpop.xlane.xlu1 %150 }
 0x2ae   :  { %v152_v31 = vadd.f32 %v151_v30, %v140_v29 }
 0x2b0   :  { %154 = vst.msk [vmem:[#allocation3] sm:$0xff] %vm41_vm0, %v152_v31 }
 0x2b1   :  { %v179_v33 = vpop.xlane.xlu1 %178 }
 0x2b2   :  { %v180_v34 = vadd.f32 %v179_v33, %v175_v32 }
 0x2b4   :  { %181 = vst.msk [vmem:[#allocation4] sm:$0xff] %vm41_vm0, %v180_v34 }
 0x2b7   :  { %v186_v35 = vld [vmem:[#allocation3] sm:$0xff] }
 0x2b8   :  { %223 = vlog2.f32 %v186_v35 }
 0x2bb   :  { %v190_v40 = vld [vmem:[#allocation4] sm:$0xff] }
 0x2c2   :  { %v224_v36 = vpop.eup %223 }
 0x2c3   :  { %v188_v37 = vmul.f32 0.6931472, %v224_v36 }
 0x2c5   :  { %v189_v39 = vadd.f32 %v188_v37, %v185_v38 }
 0x2c7   :  { %v191_v41 = vsub.f32 %v189_v39, %v190_v40 }
 0x2c9   :  { %192 = vst.msk [vmem:[%s342_s3] sm:$0xff] %vm41_vm0, %v191_v41 }
 0x2ca   :  { %197 = vsyncpa [#allocation8], 1 }
 0x2cb   :  { %198 = vsyncpa [#allocation10], 1 }

</bundles_post_ra>
